<compile_context>
chip_gen: v6e
topology: v6e:2x2x1
jax: 0.10.0
libtpu: 0.0.40
codegen_flags: <defaults>
</compile_context>

<pallas_src>
import functools

import numpy as np
import jax
import jax.numpy as jnp
from jax import lax
from jax.experimental import pallas as pl
from jax.experimental.pallas import tpu as pltpu


_LANE = 128        # vreg lane width
_TM_MAX = 2048     # max row tile: 2048*128*4B = 1 MiB per f32 input block


def _cdiv(a, b):
    return -(-a // b)


# ----------------------------------------------------------------------------
# Pallas kernel: fused (f3-f1) diff + 3x squared-error + weighted reduction
# ----------------------------------------------------------------------------

def _loss_kernel(x1_ref, x2_ref, x3_ref, x4_ref, f1_ref, f3_ref, o_ref,
                 *, lamb, steps, tm, valid_rows, needs_mask):
    i = pl.program_id(1)

    @pl.when(i == 0)
    def _():
        o_ref[...] = jnp.zeros_like(o_ref)

    f32 = jnp.float32
    # Inputs arrive in native dtype; upcast in-kernel (free for f32, cheap VPU
    # op for bf16) so all math stays f32.
    diff = f3_ref[...].astype(f32) - f1_ref[...].astype(f32)
    d1 = x1_ref[...].astype(f32) - diff
    d2 = x2_ref[...].astype(f32) - diff
    d3 = (x3_ref[...].astype(f32) + x4_ref[...].astype(f32)) - diff

    # Combine all three squared-error fields before reducing; lamb is a static
    # Python float (free VALU constant).
    sq = d1 * d1 + d2 * d2 + lamb * (d3 * d3)

    if needs_mask:
        # Zero rows beyond the valid slab (garbage in the partial edge block).
        # The mask is applied to the combined sq so all three MSE terms are
        # zeroed identically.
        c = pl.program_id(0)
        row0 = (c * steps + i) * tm
        local_row = lax.broadcasted_iota(jnp.int32, (tm, _LANE), 0)
        sq = jnp.where(row0 + local_row < valid_rows, sq, 0.0)

    # VPU-only per-step reduction: (tm,128) -> (tm//8, 8, 128) -> sum over the
    # leading axis (pure vreg adds).  No XLU / cross-lane work in the loop;
    # the (1,8,128) output block is the VMEM-resident accumulator.
    partial = jnp.sum(sq.reshape(tm // 8, 8, _LANE), axis=0)
    o_ref[...] = o_ref[...] + partial[None, :, :]


# ----------------------------------------------------------------------------
# Wrapper
# ----------------------------------------------------------------------------

def loss_forward(x1, x2, x3, x4, f1, f3, lamb=0.5):
    """Pallas implementation of Loss.forward. Returns a 0-d float32 loss."""
    shape = x1.shape
    assert all(a.shape == shape for a in (x2, x3, x4, f1, f3))

    numel = int(np.prod(shape))
    inv_n = 1.0 / float(numel)

    itemsize = jnp.dtype(x1.dtype).itemsize
    sub = max(8, 32 // itemsize)   # sublane packing: f32 -> 8, bf16 -> 16, 8-bit -> 32

    # Lane-dense slab: (rows, 128) in native dtype; only a minimal sublane pad
    # (padded lanes contribute (0 - (0-0))^2 == 0, so the mean is exact with
    # the 1/numel scale applied at the end).
    rows = _cdiv(numel, _LANE)
    rows = _cdiv(rows, sub) * sub
    padded_total = rows * _LANE

    if rows <= _TM_MAX:
        tm, nblocks = rows, 1
    else:
        tm = _TM_MAX
        nblocks = _cdiv(rows, tm)
        if nblocks % 2:                      # try to split evenly across 2 cores
            tm2, nb2 = _TM_MAX // 2, _cdiv(rows, _TM_MAX // 2)
            if nb2 % 2 == 0:
                tm, nblocks = tm2, nb2
    # Only enable the core-parallel split when it wastes no blocks, so 1-TC
    # chips (v5e/v6e) never fetch duplicate tiles; v7x gets both cores busy.
    n_par = 2 if (nblocks > 1 and nblocks % 2 == 0) else 1
    steps = nblocks // n_par
    needs_mask = (nblocks * tm != rows)

    def _to_slab(a):
        flat = a.reshape(-1)                 # native dtype, no astype
        if padded_total > numel:
            flat = jnp.pad(flat, (0, padded_total - numel))
        return flat.reshape(rows, _LANE)

    slabs = [_to_slab(a) for a in (x1, x2, x3, x4, f1, f3)]

    in_spec = pl.BlockSpec((tm, _LANE), lambda c, i: (c * steps + i, 0))
    out_spec = pl.BlockSpec((1, 8, _LANE), lambda c, i: (c, 0, 0))

    parts = pl.pallas_call(
        functools.partial(_loss_kernel, lamb=float(lamb), steps=steps, tm=tm,
                          valid_rows=rows, needs_mask=needs_mask),
        out_shape=jax.ShapeDtypeStruct((n_par, 8, _LANE), jnp.float32),
        grid_spec=pltpu.PrefetchScalarGridSpec(
            num_scalar_prefetch=0,
            grid=(n_par, steps),
            in_specs=[in_spec] * 6,
            out_specs=out_spec,
        ),
        compiler_params=pltpu.CompilerParams(
            dimension_semantics=("parallel", "arbitrary"),
            vmem_limit_bytes=32 * 1024 * 1024),
        cost_estimate=pl.CostEstimate(
            flops=10 * numel,
            transcendentals=0,
            bytes_accessed=6 * numel * itemsize + n_par * 8 * _LANE * 4),
    )(*slabs)

    # Single cross-lane collapse + 1/numel scale (one tiny fused XLA op).
    return jnp.sum(parts) * jnp.float32(inv_n)


# Pure-JAX reference (mirrors the PyTorch module exactly).
def loss_ref(x1, x2, x3, x4, f1, f3, lamb=0.5):
    diff = f3 - f1
    l1 = jnp.mean(jnp.square(x1 - diff))
    l2 = jnp.mean(jnp.square(x2 - diff))
    l3 = jnp.mean(jnp.square((x3 + x4) - diff))
    return l1 + l2 + lamb * l3


# ----------------------------------------------------------------------------

if __name__ == "__main__":
    key = jax.random.PRNGKey(0)
    ks = jax.random.split(key, 6)
    shape = (2, 4, 16, 16)          # batch=2, channels=4, spatial=16x16
    x1, x2, x3, x4, f1, f3 = (jax.random.normal(k, shape, jnp.float32)
                              for k in ks)

    fwd = jax.jit(functools.partial(loss_forward, lamb=0.5))
    out = fwd(x1, x2, x3, x4, f1, f3)
    jax.block_until_ready(out)

    ref = loss_ref(x1, x2, x3, x4, f1, f3, 0.5)
    assert out.shape == (), out.shape
    assert bool(jnp.isfinite(out))
    assert bool(jnp.allclose(out, ref, rtol=1e-5, atol=1e-6)), (out, ref)
    print("KERNEL_OK")
</pallas_src>

<mosaic_0001>
module attributes {stable_mosaic.version = 11 : i64} {
  func.func @_loss_kernel(%arg0: i32, %arg1: i32, %arg2: memref<16x128xf32, #tpu.memory_space<vmem>>, %arg3: memref<16x128xf32, #tpu.memory_space<vmem>>, %arg4: memref<16x128xf32, #tpu.memory_space<vmem>>, %arg5: memref<16x128xf32, #tpu.memory_space<vmem>>, %arg6: memref<16x128xf32, #tpu.memory_space<vmem>>, %arg7: memref<16x128xf32, #tpu.memory_space<vmem>>, %arg8: memref<1x8x128xf32, #tpu.memory_space<vmem>>) attributes {dimension_semantics = [#tpu.dimension_semantics<parallel>, #tpu.dimension_semantics<arbitrary>], iteration_bounds = array<i64: 1, 1>, scalar_prefetch = 0 : i64, scratch_operands = 0 : i64, tpu.core_type = #tpu.core_type<tc>, window_params = [{transform_indices = @transform_0, window_bounds = array<i64: 16, 128>}, {transform_indices = @transform_1, window_bounds = array<i64: 16, 128>}, {transform_indices = @transform_2, window_bounds = array<i64: 16, 128>}, {transform_indices = @transform_3, window_bounds = array<i64: 16, 128>}, {transform_indices = @transform_4, window_bounds = array<i64: 16, 128>}, {transform_indices = @transform_5, window_bounds = array<i64: 16, 128>}, {transform_indices = @transform_6, window_bounds = array<i64: 1, 8, 128>}]} {
    %c0_i32 = arith.constant 0 : i32
    %0 = arith.cmpi eq, %arg1, %c0_i32 : i32
    %1 = arith.extui %0 : i1 to i32
    %c0_i32_0 = arith.constant 0 : i32
    %2 = arith.cmpi ne, %1, %c0_i32_0 : i32
    scf.if %2 {
      %cst_19 = arith.constant 0.000000e+00 : f32
      %27 = vector.broadcast %cst_19 : f32 to vector<1x8x128xf32>
      %c0_20 = arith.constant 0 : index
      %c0_21 = arith.constant 0 : index
      %c0_22 = arith.constant 0 : index
      %28 = vector.load %arg8[%c0_20, %c0_21, %c0_22] : memref<1x8x128xf32, #tpu.memory_space<vmem>>, vector<1x8x128xf32>
      tpu.vector_store %arg8[%c0_20, %c0_21, %c0_22], %27 {strides = array<i32>} : memref<1x8x128xf32, #tpu.memory_space<vmem>>, vector<1x8x128xf32>,
    } else {
    }
    %c0 = arith.constant 0 : index
    %c0_1 = arith.constant 0 : index
    %3 = vector.load %arg7[%c0, %c0_1] : memref<16x128xf32, #tpu.memory_space<vmem>>, vector<16x128xf32>
    %c0_2 = arith.constant 0 : index
    %c0_3 = arith.constant 0 : index
    %4 = vector.load %arg6[%c0_2, %c0_3] : memref<16x128xf32, #tpu.memory_space<vmem>>, vector<16x128xf32>
    %5 = arith.subf %3, %4 : vector<16x128xf32>
    %c0_4 = arith.constant 0 : index
    %c0_5 = arith.constant 0 : index
    %6 = vector.load %arg2[%c0_4, %c0_5] : memref<16x128xf32, #tpu.memory_space<vmem>>, vector<16x128xf32>
    %7 = arith.subf %6, %5 : vector<16x128xf32>
    %c0_6 = arith.constant 0 : index
    %c0_7 = arith.constant 0 : index
    %8 = vector.load %arg3[%c0_6, %c0_7] : memref<16x128xf32, #tpu.memory_space<vmem>>, vector<16x128xf32>
    %9 = arith.subf %8, %5 : vector<16x128xf32>
    %c0_8 = arith.constant 0 : index
    %c0_9 = arith.constant 0 : index
    %10 = vector.load %arg4[%c0_8, %c0_9] : memref<16x128xf32, #tpu.memory_space<vmem>>, vector<16x128xf32>
    %c0_10 = arith.constant 0 : index
    %c0_11 = arith.constant 0 : index
    %11 = vector.load %arg5[%c0_10, %c0_11] : memref<16x128xf32, #tpu.memory_space<vmem>>, vector<16x128xf32>
    %12 = arith.addf %10, %11 : vector<16x128xf32>
    %13 = arith.subf %12, %5 : vector<16x128xf32>
    %14 = arith.mulf %7, %7 : vector<16x128xf32>
    %15 = arith.mulf %9, %9 : vector<16x128xf32>
    %16 = arith.addf %14, %15 : vector<16x128xf32>
    %17 = arith.mulf %13, %13 : vector<16x128xf32>
    %cst = arith.constant 5.000000e-01 : f32
    %18 = vector.broadcast %cst : f32 to vector<16x128xf32>
    %19 = arith.mulf %18, %17 : vector<16x128xf32>
    %20 = arith.addf %16, %19 : vector<16x128xf32>
    %21 = vector.shape_cast %20 : vector<16x128xf32> to vector<2x8x128xf32>
    %cst_12 = arith.constant dense<0.000000e+00> : vector<8x128xf32>
    %22 = vector.multi_reduction <add>, %21, %cst_12 [0] : vector<2x8x128xf32> to vector<8x128xf32>
    %c0_13 = arith.constant 0 : index
    %c0_14 = arith.constant 0 : index
    %c0_15 = arith.constant 0 : index
    %23 = vector.load %arg8[%c0_13, %c0_14, %c0_15] : memref<1x8x128xf32, #tpu.memory_space<vmem>>, vector<1x8x128xf32>
    %24 = vector.shape_cast %22 : vector<8x128xf32> to vector<1x8x128xf32>
    %25 = arith.addf %23, %24 : vector<1x8x128xf32>
    %c0_16 = arith.constant 0 : index
    %c0_17 = arith.constant 0 : index
    %c0_18 = arith.constant 0 : index
    %26 = vector.load %arg8[%c0_16, %c0_17, %c0_18] : memref<1x8x128xf32, #tpu.memory_space<vmem>>, vector<1x8x128xf32>
    tpu.vector_store %arg8[%c0_16, %c0_17, %c0_18], %25 {strides = array<i32>} : memref<1x8x128xf32, #tpu.memory_space<vmem>>, vector<1x8x128xf32>,
    return
  }
  func.func @transform_0(%arg0: i32, %arg1: i32) -> (i32, i32) {
    %c1_i32 = arith.constant 1 : i32
    %0 = arith.muli %arg0, %c1_i32 : i32
    %1 = arith.addi %0, %arg1 : i32
    %c0_i32 = arith.constant 0 : i32
    %c0_i32_0 = arith.constant 0 : i32
    return %1, %c0_i32 : i32, i32
  }
  func.func @transform_1(%arg0: i32, %arg1: i32) -> (i32, i32) {
    %c1_i32 = arith.constant 1 : i32
    %0 = arith.muli %arg0, %c1_i32 : i32
    %1 = arith.addi %0, %arg1 : i32
    %c0_i32 = arith.constant 0 : i32
    %c0_i32_0 = arith.constant 0 : i32
    return %1, %c0_i32 : i32, i32
  }
  func.func @transform_2(%arg0: i32, %arg1: i32) -> (i32, i32) {
    %c1_i32 = arith.constant 1 : i32
    %0 = arith.muli %arg0, %c1_i32 : i32
    %1 = arith.addi %0, %arg1 : i32
    %c0_i32 = arith.constant 0 : i32
    %c0_i32_0 = arith.constant 0 : i32
    return %1, %c0_i32 : i32, i32
  }
  func.func @transform_3(%arg0: i32, %arg1: i32) -> (i32, i32) {
    %c1_i32 = arith.constant 1 : i32
    %0 = arith.muli %arg0, %c1_i32 : i32
    %1 = arith.addi %0, %arg1 : i32
    %c0_i32 = arith.constant 0 : i32
    %c0_i32_0 = arith.constant 0 : i32
    return %1, %c0_i32 : i32, i32
  }
  func.func @transform_4(%arg0: i32, %arg1: i32) -> (i32, i32) {
    %c1_i32 = arith.constant 1 : i32
    %0 = arith.muli %arg0, %c1_i32 : i32
    %1 = arith.addi %0, %arg1 : i32
    %c0_i32 = arith.constant 0 : i32
    %c0_i32_0 = arith.constant 0 : i32
    return %1, %c0_i32 : i32, i32
  }
  func.func @transform_5(%arg0: i32, %arg1: i32) -> (i32, i32) {
    %c1_i32 = arith.constant 1 : i32
    %0 = arith.muli %arg0, %c1_i32 : i32
    %1 = arith.addi %0, %arg1 : i32
    %c0_i32 = arith.constant 0 : i32
    %c0_i32_0 = arith.constant 0 : i32
    return %1, %c0_i32 : i32, i32
  }
  func.func @transform_6(%arg0: i32, %arg1: i32) -> (i32, i32, i32) {
    %c0_i32 = arith.constant 0 : i32
    %c0_i32_0 = arith.constant 0 : i32
    %c0_i32_1 = arith.constant 0 : i32
    return %arg0, %c0_i32, %c0_i32_0 : i32, i32, i32
  }
}

</mosaic_0001>

<bundles_post_ra>
// kernel: loss_forward.1
= control target key start
LH: loop header
LB: loop body
LE: loop exit
PB: predicated region body
PF: predicated region fallthrough
CT: control target
= control target key end

     0   :  { %s313_s0 = inlined_call_operand.vmem [shape: f32[16,128], index: 0, kind: input, shape index: {}]   ;;  %s314_s1 = inlined_call_operand.vmem [shape: f32[16,128], index: 1, kind: input, shape index: {}]   ;;  %s315_s2 = inlined_call_operand.vmem [shape: f32[16,128], index: 2, kind: input, shape index: {}]   ;;  %s316_s4 = inlined_call_operand.vmem [shape: f32[16,128], index: 4, kind: input, shape index: {}]   ;;  %s317_s5 = inlined_call_operand.vmem [shape: f32[16,128], index: 5, kind: input, shape index: {}]   ;;  %s318_s3 = inlined_call_operand.vmem [shape: f32[16,128], index: 3, kind: input, shape index: {}]   ;;  %s319_s6 = inlined_call_operand.vmem [shape: f32[1,8,128], index: 6, kind: output, shape index: {}]  }
   0x1   :  { %v160_v0 = vld [vmem:[%s317_s5] sm:$0xff]  ;;  %v161_v1 = vld [vmem:[%s317_s5 + $0x8] sm:$0xff] }
   0x2   :  { %v162_v2 = vld [vmem:[%s316_s4] sm:$0xff]  ;;  %v163_v3 = vld [vmem:[%s316_s4 + $0x8] sm:$0xff] }
   0x3   :  { %v164_v4 = vsub.f32 %v160_v0, %v162_v2  ;;  %v166_v5 = vld [vmem:[%s313_s0] sm:$0xff]  ;;  %v167_v6 = vld [vmem:[%s313_s0 + $0x8] sm:$0xff]  ;;  %v165_v7 = vsub.f32 %v161_v1, %v163_v3 }
   0x4   :  { %v170_v8 = vld [vmem:[%s314_s1] sm:$0xff]  ;;  %v171_v9 = vld [vmem:[%s314_s1 + $0x8] sm:$0xff] }
   0x5   :  { %v174_v10 = vld [vmem:[%s315_s2] sm:$0xff]  ;;  %v168_v11 = vsub.f32 %v166_v5, %v164_v4  ;;  %v172_v12 = vsub.f32 %v170_v8, %v164_v4  ;;  %v175_v13 = vld [vmem:[%s315_s2 + $0x8] sm:$0xff]  ;;  %v169_v16 = vsub.f32 %v167_v6, %v165_v7  ;;  %v173_v17 = vsub.f32 %v171_v9, %v165_v7 }
   0x6   :  { %v176_v14 = vld [vmem:[%s318_s3] sm:$0xff]  ;;  %v177_v15 = vld [vmem:[%s318_s3 + $0x8] sm:$0xff] }
   0x7   :  { %v178_v18 = vadd.f32 %v176_v14, %v174_v10  ;;  %v179_v19 = vadd.f32 %v177_v15, %v175_v13  ;;  %v182_v20 = vmul.f32 %v168_v11, %v168_v11  ;;  %v184_v21 = vmul.f32 %v172_v12, %v172_v12 }
   0x8   :  { %v183_v24 = vmul.f32 %v169_v16, %v169_v16  ;;  %v185_v25 = vmul.f32 %v173_v17, %v173_v17 }
   0x9   :  { %v180_v22 = vsub.f32 %v178_v18, %v164_v4  ;;  %v181_v23 = vsub.f32 %v179_v19, %v165_v7  ;;  %v186_v26 = vadd.f32 %v184_v21, %v182_v20 }
   0xa   :  { %v187_v27 = vadd.f32 %v185_v25, %v183_v24 }
   0xb   :  { %v188_v28 = vmul.f32 %v180_v22, %v180_v22  ;;  %v189_v29 = vmul.f32 %v181_v23, %v181_v23 }
   0xd   :  { %v190_v30 = vmul.f32 0.5, %v188_v28  ;;  %v191_v31 = vmul.f32 0.5, %v189_v29 }
   0xf   :  { %v192_v32 = vadd.f32 %v190_v30, %v186_v26  ;;  %v193_v33 = vadd.f32 %v191_v31, %v187_v27 }
  0x11   :  { %v194_v34 = vadd.f32 %v193_v33, %v192_v32 }
  0x13   :  { %197 = vst [vmem:[%s319_s6] sm:$0xff] %v194_v34 }

</bundles_post_ra>
